<compile_context>
chip_gen: v7x
topology: tpu7x:2x2x1
jax: 0.10.0
libtpu: 0.0.40
codegen_flags: <defaults>
</compile_context>

<pallas_src>
import functools
import math

import jax
import jax.numpy as jnp
from jax.experimental import pallas as pl
from jax.experimental.pallas import tpu as pltpu


_INV_SQRT2 = 1.0 / math.sqrt(2.0)


# ----------------------------------------------------------------------------
# Helpers
# ----------------------------------------------------------------------------
def _round_up(x, m):
    return (x + m - 1) // m * m


def _largest_divisor_tile(total, pref, mult):
    """Largest multiple of `mult` that divides `total` and is <= pref."""
    if total <= mult or total % mult != 0:
        return total
    best = mult
    d = mult
    cap = min(pref, total)
    while d <= cap:
        if total % d == 0:
            best = d
        d += mult
    return best


def _vmem_capacity_bytes():
    try:
        info = pltpu.get_tpu_info()
        cap = getattr(info, "vmem_capacity_bytes", None)
        if cap:
            return int(cap)
    except Exception:
        pass
    return 64 << 20  # conservative fallback: v7x per-TensorCore physical VMEM


def _weight_specs(n_embd, hidden):
    """Full-array, constant-index weight specs; single-buffered if supported."""
    idx = lambda i: (0, 0)
    try:
        specs = (
            pl.BlockSpec((n_embd, hidden), idx, pipeline_mode=pl.Buffered(1)),
            pl.BlockSpec((hidden, n_embd), idx, pipeline_mode=pl.Buffered(1)),
        )
        return specs, 1
    except (TypeError, AttributeError):
        # Older BlockSpec without pipeline_mode: constant index_map still means
        # the weights are only DMA'd once, but two buffers get allocated.
        specs = (
            pl.BlockSpec((n_embd, hidden), idx),
            pl.BlockSpec((hidden, n_embd), idx),
        )
        return specs, 2


def _gelu(h, approximate):
    if approximate:
        # tanh-approx GELU: tanh goes to the EUP (its own VLIW slot) and hides
        # under the MXU pushes.  ~1e-3 rel. deviation from torch's exact gelu.
        return jax.nn.gelu(h, approximate=True)
    # Exact erf GELU (torch F.gelu default).  Lowers to a VPU polynomial.
    return 0.5 * h * (1.0 + jax.lax.erf(h * _INV_SQRT2))


# ----------------------------------------------------------------------------
# Kernels
# ----------------------------------------------------------------------------
def _mlp_resident_kernel(x_ref, w_fc_ref, w_proj_ref, o_ref, *, approximate):
    # x_ref:      (tm, n_embd)       compute dtype (bf16 or f32)
    # w_fc_ref:   (n_embd, hidden)   pre-transposed, fully VMEM-resident
    # w_proj_ref: (hidden, n_embd)   pre-transposed, fully VMEM-resident
    # o_ref:      (tm, n_embd)
    h = jnp.dot(x_ref[...], w_fc_ref[...], preferred_element_type=jnp.float32)
    h = _gelu(h, approximate)
    o_ref[...] = jnp.dot(
        h.astype(w_proj_ref.dtype), w_proj_ref[...],
        preferred_element_type=jnp.float32,
    ).astype(o_ref.dtype)


def _mlp_streamed_kernel(x_ref, w_fc_ref, w_proj_ref, o_ref, acc_ref, *,
                         approximate):
    # grid = (M//tm, hidden//tk); k (hidden/reduction) innermost, "arbitrary".
    k = pl.program_id(1)

    @pl.when(k == 0)
    def _init():
        acc_ref[...] = jnp.zeros_like(acc_ref)

    # h_tile = x @ w_fc_t[:, k-slab] -> (tm, tk)
    h = jnp.dot(x_ref[...], w_fc_ref[...], preferred_element_type=jnp.float32)
    h = _gelu(h, approximate)
    # acc += gelu(h_tile) @ w_proj_t[k-slab, :] -> (tm, n_embd)
    acc_ref[...] += jnp.dot(
        h.astype(w_proj_ref.dtype), w_proj_ref[...],
        preferred_element_type=jnp.float32)

    @pl.when(k == pl.num_programs(1) - 1)
    def _fin():
        o_ref[...] = acc_ref[...].astype(o_ref.dtype)


# ----------------------------------------------------------------------------
# pallas_call wrappers
# ----------------------------------------------------------------------------
def _resident_call(x2d, w_fc_t, w_proj_t, out_dtype, tm_eff, weight_specs,
                   approximate, vmem_limit):
    M_pad, n_embd = x2d.shape
    hidden = w_fc_t.shape[1]
    itemsize = jnp.dtype(x2d.dtype).itemsize
    out_itemsize = jnp.dtype(out_dtype).itemsize
    grid = (M_pad // tm_eff,)

    cost = pl.CostEstimate(
        flops=4 * M_pad * n_embd * hidden,
        transcendentals=M_pad * hidden,  # tanh (EUP); erf path is a VPU poly
        bytes_accessed=(M_pad * n_embd * itemsize           # x once
                        + 2 * n_embd * hidden * itemsize    # weights once
                        + M_pad * n_embd * out_itemsize),   # y once
    )

    return pl.pallas_call(
        functools.partial(_mlp_resident_kernel, approximate=approximate),
        out_shape=jax.ShapeDtypeStruct((M_pad, n_embd), out_dtype),
        grid_spec=pltpu.PrefetchScalarGridSpec(
            num_scalar_prefetch=0,
            grid=grid,
            in_specs=[
                pl.BlockSpec((tm_eff, n_embd), lambda i: (i, 0)),
                weight_specs[0],
                weight_specs[1],
            ],
            out_specs=pl.BlockSpec((tm_eff, n_embd), lambda i: (i, 0)),
        ),
        compiler_params=pltpu.CompilerParams(
            # Row tiles are independent -> megacore / dual-TC shardable.
            # TODO(synk): if plain "parallel" doesn't split across v7x's 2 TCs,
            # switch to pltpu.CORE_PARALLEL on a leading core axis.
            dimension_semantics=("parallel",),
            vmem_limit_bytes=int(vmem_limit)),
        cost_estimate=cost,
    )(x2d, w_fc_t, w_proj_t)


def _streamed_call(x2d, w_fc_t, w_proj_t, out_dtype, tm_eff, tk_pref,
                   approximate, vmem_limit):
    M_pad, n_embd = x2d.shape
    hidden = w_fc_t.shape[1]
    itemsize = jnp.dtype(x2d.dtype).itemsize
    out_itemsize = jnp.dtype(out_dtype).itemsize
    tk_eff = _largest_divisor_tile(hidden, tk_pref, 128)
    grid = (M_pad // tm_eff, hidden // tk_eff)

    cost = pl.CostEstimate(
        flops=4 * M_pad * n_embd * hidden,
        transcendentals=M_pad * hidden,
        bytes_accessed=(M_pad * n_embd * itemsize
                        + grid[0] * 2 * n_embd * hidden * itemsize  # restreamed
                        + M_pad * n_embd * out_itemsize),
    )

    return pl.pallas_call(
        functools.partial(_mlp_streamed_kernel, approximate=approximate),
        out_shape=jax.ShapeDtypeStruct((M_pad, n_embd), out_dtype),
        grid_spec=pltpu.PrefetchScalarGridSpec(
            num_scalar_prefetch=0,
            grid=grid,
            in_specs=[
                pl.BlockSpec((tm_eff, n_embd), lambda i, k: (i, 0)),
                pl.BlockSpec((n_embd, tk_eff), lambda i, k: (0, k)),
                pl.BlockSpec((tk_eff, n_embd), lambda i, k: (k, 0)),
            ],
            out_specs=pl.BlockSpec((tm_eff, n_embd), lambda i, k: (i, 0)),
            scratch_shapes=[pltpu.VMEM((tm_eff, n_embd), jnp.float32)],
        ),
        compiler_params=pltpu.CompilerParams(
            dimension_semantics=("parallel", "arbitrary"),
            vmem_limit_bytes=int(vmem_limit)),
        cost_estimate=cost,
    )(x2d, w_fc_t, w_proj_t)


def mlp_forward(x, w_fc, w_proj, *, tm=256, tm_stream=512, tk_stream=512,
                compute_dtype=jnp.bfloat16, approximate_gelu=True,
                force_stream=False):
    """x: (B, T, n_embd); w_fc: (4n, n) torch layout; w_proj: (n, 4n) torch layout."""
    B, T, n_embd = x.shape
    hidden = w_fc.shape[0]
    assert w_fc.shape == (hidden, n_embd)
    assert w_proj.shape == (n_embd, hidden)

    M = B * T
    sublane = 16 if compute_dtype == jnp.bfloat16 else 8
    itemsize = jnp.dtype(compute_dtype).itemsize
    out_itemsize = jnp.dtype(x.dtype).itemsize

    vmem_cap = _vmem_capacity_bytes()
    # Raise the scoped VMEM limit toward physical (v5e default 16 MiB is far
    # too small for weight residency) while leaving compiler headroom.
    vmem_limit = int(max(32 << 20, min(vmem_cap - (8 << 20),
                                       int(vmem_cap * 0.875))))

    weight_specs, weight_buf_factor = _weight_specs(n_embd, hidden)

    def _tm_eff(pref):
        return min(_round_up(pref, sublane), _round_up(max(M, 1), sublane))

    def _resident_fits(tm_rows):
        weights = weight_buf_factor * 2 * n_embd * hidden * itemsize
        x_tiles = 2 * tm_rows * n_embd * itemsize       # double-buffered input
        o_tiles = 2 * tm_rows * n_embd * out_itemsize   # double-buffered output
        h_live = 2 * tm_rows * hidden * 4               # f32 intermediates
        return weights + x_tiles + o_tiles + h_live <= int(0.9 * vmem_limit)

    use_resident = (not force_stream) and _resident_fits(_tm_eff(tm))
    tm_eff = _tm_eff(tm if use_resident else tm_stream)
    M_pad = _round_up(M, tm_eff)

    x2d = x.reshape(M, n_embd).astype(compute_dtype)
    if M_pad != M:
        x2d = jnp.pad(x2d, ((0, M_pad - M), (0, 0)))

    # Fold the transpose into the compute-dtype cast: standard (M,K)x(K,N)
    # MXU feed, no trans-B / XLU transpose work per grid step.
    # TODO(synk): persist w_fc_t / w_proj_t (bf16, pre-transposed) in the
    # training state so this per-call cast+transpose HBM pass disappears.
    w_fc_t = w_fc.T.astype(compute_dtype)       # (n_embd, hidden): h = x @ w_fc_t
    w_proj_t = w_proj.T.astype(compute_dtype)   # (hidden, n_embd): y = g @ w_proj_t

    if use_resident:
        try:
            out2d = _resident_call(x2d, w_fc_t, w_proj_t, x.dtype, tm_eff,
                                   weight_specs, approximate_gelu, vmem_limit)
        except Exception:
            # VMEM over-estimate / unsupported single-buffering: fall back to
            # the streamed-k reduction (always compiles).
            out2d = _streamed_call(x2d, w_fc_t, w_proj_t, x.dtype, tm_eff,
                                   tk_stream, approximate_gelu, vmem_limit)
    else:
        out2d = _streamed_call(x2d, w_fc_t, w_proj_t, x.dtype, tm_eff,
                               tk_stream, approximate_gelu, vmem_limit)

    if M_pad != M:
        out2d = out2d[:M]
    return out2d.reshape(B, T, n_embd)


# ----------------------------------------------------------------------------
# Reference & test
# ----------------------------------------------------------------------------
def _reference(x, w_fc, w_proj, compute_dtype, approximate):
    """Plain-JAX reference using the same dtype/GELU policy as the kernel."""
    B, T, n_embd = x.shape
    xk = x.reshape(-1, n_embd).astype(compute_dtype)
    h = jnp.dot(xk, w_fc.astype(compute_dtype).T,
                preferred_element_type=jnp.float32)
    h = _gelu(h, approximate)
    y = jnp.dot(h.astype(compute_dtype), w_proj.astype(compute_dtype).T,
                preferred_element_type=jnp.float32)
    return y.reshape(B, T, n_embd).astype(x.dtype)


if __name__ == "__main__":
    # Small config: batch=2, seq=8, n_embd=32 -> hidden=128
    B, T, n_embd = 2, 8, 32
    hidden = 4 * n_embd

    key = jax.random.PRNGKey(0)
    kx, kfc, kproj = jax.random.split(key, 3)

    x = jax.random.normal(kx, (B, T, n_embd), dtype=jnp.float32)
    # nn.Linear default init: U(-1/sqrt(fan_in), 1/sqrt(fan_in)), weight (out, in)
    bound_fc = 1.0 / math.sqrt(n_embd)
    bound_proj = 1.0 / math.sqrt(hidden)
    w_fc = jax.random.uniform(kfc, (hidden, n_embd), jnp.float32,
                              -bound_fc, bound_fc)
    w_proj = jax.random.uniform(kproj, (n_embd, hidden), jnp.float32,
                                -bound_proj, bound_proj)

    # 1) Exact torch semantics (erf GELU, f32 compute) -- resident-weight path.
    out_f32 = jax.block_until_ready(
        mlp_forward(x, w_fc, w_proj, compute_dtype=jnp.float32,
                    approximate_gelu=False))
    ref_f32 = _reference(x, w_fc, w_proj, jnp.float32, approximate=False)
    assert jnp.allclose(out_f32, ref_f32, atol=1e-4, rtol=1e-4), "f32/erf mismatch"

    # 2) Production config: bf16 MXU inputs + tanh-approx GELU -- resident path.
    out_bf16 = jax.block_until_ready(
        mlp_forward(x, w_fc, w_proj, compute_dtype=jnp.bfloat16,
                    approximate_gelu=True))
    ref_bf16 = _reference(x, w_fc, w_proj, jnp.bfloat16, approximate=True)
    assert jnp.allclose(out_bf16, ref_bf16, atol=2e-2, rtol=2e-2), "bf16 mismatch"

    # 3) Streamed-k fallback path (weights too large for VMEM residency).
    out_stream = jax.block_until_ready(
        mlp_forward(x, w_fc, w_proj, compute_dtype=jnp.bfloat16,
                    approximate_gelu=True, force_stream=True))
    assert jnp.allclose(out_stream, ref_bf16, atol=2e-2, rtol=2e-2), "streamed mismatch"

    print("KERNEL_OK")
</pallas_src>

<mosaic_0001>
module attributes {stable_mosaic.version = 11 : i64} {
  func.func @_mlp_resident_kernel(%arg0: i32, %arg1: memref<16x32xf32, #tpu.memory_space<vmem>>, %arg2: memref<32x128xf32, #tpu.memory_space<vmem>>, %arg3: memref<128x32xf32, #tpu.memory_space<vmem>>, %arg4: memref<16x32xf32, #tpu.memory_space<vmem>>) attributes {dimension_semantics = [#tpu.dimension_semantics<parallel>], iteration_bounds = array<i64: 1>, scalar_prefetch = 0 : i64, scratch_operands = 0 : i64, tpu.core_type = #tpu.core_type<tc>, window_params = [{transform_indices = @transform_0, window_bounds = array<i64: 16, 32>}, {pipeline_mode = #tpu.pipeline_mode<synchronous>, transform_indices = @transform_1, window_bounds = array<i64: 32, 128>}, {pipeline_mode = #tpu.pipeline_mode<synchronous>, transform_indices = @transform_2, window_bounds = array<i64: 128, 32>}, {transform_indices = @transform_3, window_bounds = array<i64: 16, 32>}]} {
    %c0 = arith.constant 0 : index
    %c0_0 = arith.constant 0 : index
    %0 = vector.load %arg1[%c0, %c0_0] : memref<16x32xf32, #tpu.memory_space<vmem>>, vector<16x32xf32>
    %c0_1 = arith.constant 0 : index
    %c0_2 = arith.constant 0 : index
    %1 = vector.load %arg2[%c0_1, %c0_2] : memref<32x128xf32, #tpu.memory_space<vmem>>, vector<32x128xf32>
    %cst = arith.constant dense<0.000000e+00> : vector<16x128xf32>
    %2 = tpu.matmul %0, %1, %cst {dimension_numbers = #tpu.dot_dimension_numbers<[1], [0], [0], [1], [0, 0, 1, 1], [], []>} : vector<16x32xf32>, vector<32x128xf32>, vector<16x128xf32> -> vector<16x128xf32>
    %cst_3 = arith.constant 5.000000e-01 : f32
    %3 = vector.broadcast %cst_3 : f32 to vector<16x128xf32>
    %4 = arith.mulf %3, %2 : vector<16x128xf32>
    %cst_4 = arith.constant 0.707106769 : f32
    %5 = vector.broadcast %cst_4 : f32 to vector<16x128xf32>
    %6 = arith.mulf %2, %5 : vector<16x128xf32>
    %7 = math.erf %6 : vector<16x128xf32>
    %cst_5 = arith.constant 1.000000e+00 : f32
    %8 = vector.broadcast %cst_5 : f32 to vector<16x128xf32>
    %9 = arith.addf %8, %7 : vector<16x128xf32>
    %10 = arith.mulf %4, %9 : vector<16x128xf32>
    %c0_6 = arith.constant 0 : index
    %c0_7 = arith.constant 0 : index
    %11 = vector.load %arg3[%c0_6, %c0_7] : memref<128x32xf32, #tpu.memory_space<vmem>>, vector<128x32xf32>
    %cst_8 = arith.constant dense<0.000000e+00> : vector<16x32xf32>
    %12 = tpu.matmul %10, %11, %cst_8 {dimension_numbers = #tpu.dot_dimension_numbers<[1], [0], [0], [1], [0, 0, 1, 1], [], []>} : vector<16x128xf32>, vector<128x32xf32>, vector<16x32xf32> -> vector<16x32xf32>
    %c0_9 = arith.constant 0 : index
    %c0_10 = arith.constant 0 : index
    %13 = vector.load %arg4[%c0_9, %c0_10] : memref<16x32xf32, #tpu.memory_space<vmem>>, vector<16x32xf32>
    tpu.vector_store %arg4[%c0_9, %c0_10], %12 {strides = array<i32>} : memref<16x32xf32, #tpu.memory_space<vmem>>, vector<16x32xf32>,
    return
  }
  func.func @transform_0(%arg0: i32) -> (i32, i32) {
    %c0_i32 = arith.constant 0 : i32
    %c0_i32_0 = arith.constant 0 : i32
    return %arg0, %c0_i32 : i32, i32
  }
  func.func @transform_1(%arg0: i32) -> (i32, i32) {
    %c0_i32 = arith.constant 0 : i32
    %c0_i32_0 = arith.constant 0 : i32
    %c0_i32_1 = arith.constant 0 : i32
    return %c0_i32, %c0_i32_0 : i32, i32
  }
  func.func @transform_2(%arg0: i32) -> (i32, i32) {
    %c0_i32 = arith.constant 0 : i32
    %c0_i32_0 = arith.constant 0 : i32
    %c0_i32_1 = arith.constant 0 : i32
    return %c0_i32, %c0_i32_0 : i32, i32
  }
  func.func @transform_3(%arg0: i32) -> (i32, i32) {
    %c0_i32 = arith.constant 0 : i32
    %c0_i32_0 = arith.constant 0 : i32
    return %arg0, %c0_i32 : i32, i32
  }
}

module attributes {stable_mosaic.version = 11 : i64} {
  func.func @_mlp_streamed_kernel(%arg0: i32, %arg1: i32, %arg2: memref<16x32xf32, #tpu.memory_space<vmem>>, %arg3: memref<32x128xf32, #tpu.memory_space<vmem>>, %arg4: memref<128x32xf32, #tpu.memory_space<vmem>>, %arg5: memref<16x32xf32, #tpu.memory_space<vmem>>, %arg6: memref<16x32xf32, #tpu.memory_space<vmem>>) attributes {dimension_semantics = [#tpu.dimension_semantics<parallel>, #tpu.dimension_semantics<arbitrary>], iteration_bounds = array<i64: 1, 1>, scalar_prefetch = 0 : i64, scratch_operands = 1 : i64, tpu.core_type = #tpu.core_type<tc>, window_params = [{transform_indices = @transform_0, window_bounds = array<i64: 16, 32>}, {transform_indices = @transform_1, window_bounds = array<i64: 32, 128>}, {transform_indices = @transform_2, window_bounds = array<i64: 128, 32>}, {transform_indices = @transform_3, window_bounds = array<i64: 16, 32>}]} {
    %c0_i32 = arith.constant 0 : i32
    %0 = arith.cmpi eq, %arg1, %c0_i32 : i32
    %1 = arith.extui %0 : i1 to i32
    %c0_i32_0 = arith.constant 0 : i32
    %2 = arith.cmpi ne, %1, %c0_i32_0 : i32
    scf.if %2 {
      %cst_16 = arith.constant 0.000000e+00 : f32
      %22 = vector.broadcast %cst_16 : f32 to vector<16x32xf32>
      %c0_17 = arith.constant 0 : index
      %c0_18 = arith.constant 0 : index
      %23 = vector.load %arg6[%c0_17, %c0_18] : memref<16x32xf32, #tpu.memory_space<vmem>>, vector<16x32xf32>
      tpu.vector_store %arg6[%c0_17, %c0_18], %22 {strides = array<i32>} : memref<16x32xf32, #tpu.memory_space<vmem>>, vector<16x32xf32>,
    } else {
    }
    %c0 = arith.constant 0 : index
    %c0_1 = arith.constant 0 : index
    %3 = vector.load %arg2[%c0, %c0_1] : memref<16x32xf32, #tpu.memory_space<vmem>>, vector<16x32xf32>
    %c0_2 = arith.constant 0 : index
    %c0_3 = arith.constant 0 : index
    %4 = vector.load %arg3[%c0_2, %c0_3] : memref<32x128xf32, #tpu.memory_space<vmem>>, vector<32x128xf32>
    %cst = arith.constant dense<0.000000e+00> : vector<16x128xf32>
    %5 = tpu.matmul %3, %4, %cst {dimension_numbers = #tpu.dot_dimension_numbers<[1], [0], [0], [1], [0, 0, 1, 1], [], []>} : vector<16x32xf32>, vector<32x128xf32>, vector<16x128xf32> -> vector<16x128xf32>
    %cst_4 = arith.constant 5.000000e-01 : f32
    %6 = vector.broadcast %cst_4 : f32 to vector<16x128xf32>
    %7 = arith.mulf %6, %5 : vector<16x128xf32>
    %cst_5 = arith.constant 0.707106769 : f32
    %8 = vector.broadcast %cst_5 : f32 to vector<16x128xf32>
    %9 = arith.mulf %5, %8 : vector<16x128xf32>
    %10 = math.erf %9 : vector<16x128xf32>
    %cst_6 = arith.constant 1.000000e+00 : f32
    %11 = vector.broadcast %cst_6 : f32 to vector<16x128xf32>
    %12 = arith.addf %11, %10 : vector<16x128xf32>
    %13 = arith.mulf %7, %12 : vector<16x128xf32>
    %c0_7 = arith.constant 0 : index
    %c0_8 = arith.constant 0 : index
    %14 = vector.load %arg6[%c0_7, %c0_8] : memref<16x32xf32, #tpu.memory_space<vmem>>, vector<16x32xf32>
    %c0_9 = arith.constant 0 : index
    %c0_10 = arith.constant 0 : index
    %15 = vector.load %arg4[%c0_9, %c0_10] : memref<128x32xf32, #tpu.memory_space<vmem>>, vector<128x32xf32>
    %cst_11 = arith.constant dense<0.000000e+00> : vector<16x32xf32>
    %16 = tpu.matmul %13, %15, %cst_11 {dimension_numbers = #tpu.dot_dimension_numbers<[1], [0], [0], [1], [0, 0, 1, 1], [], []>} : vector<16x128xf32>, vector<128x32xf32>, vector<16x32xf32> -> vector<16x32xf32>
    %17 = arith.addf %14, %16 : vector<16x32xf32>
    %c0_12 = arith.constant 0 : index
    %c0_13 = arith.constant 0 : index
    %18 = vector.load %arg6[%c0_12, %c0_13] : memref<16x32xf32, #tpu.memory_space<vmem>>, vector<16x32xf32>
    tpu.vector_store %arg6[%c0_12, %c0_13], %17 {strides = array<i32>} : memref<16x32xf32, #tpu.memory_space<vmem>>, vector<16x32xf32>,
    %c0_i32_14 = arith.constant 0 : i32
    %19 = arith.cmpi eq, %arg1, %c0_i32_14 : i32
    %20 = arith.extui %19 : i1 to i32
    %c0_i32_15 = arith.constant 0 : i32
    %21 = arith.cmpi ne, %20, %c0_i32_15 : i32
    scf.if %21 {
      %c0_16 = arith.constant 0 : index
      %c0_17 = arith.constant 0 : index
      %22 = vector.load %arg6[%c0_16, %c0_17] : memref<16x32xf32, #tpu.memory_space<vmem>>, vector<16x32xf32>
      %c0_18 = arith.constant 0 : index
      %c0_19 = arith.constant 0 : index
      %23 = vector.load %arg5[%c0_18, %c0_19] : memref<16x32xf32, #tpu.memory_space<vmem>>, vector<16x32xf32>
      tpu.vector_store %arg5[%c0_18, %c0_19], %22 {strides = array<i32>} : memref<16x32xf32, #tpu.memory_space<vmem>>, vector<16x32xf32>,
    } else {
    }
    return
  }
  func.func @transform_0(%arg0: i32, %arg1: i32) -> (i32, i32) {
    %c0_i32 = arith.constant 0 : i32
    %c0_i32_0 = arith.constant 0 : i32
    return %arg0, %c0_i32 : i32, i32
  }
  func.func @transform_1(%arg0: i32, %arg1: i32) -> (i32, i32) {
    %c0_i32 = arith.constant 0 : i32
    %c0_i32_0 = arith.constant 0 : i32
    return %c0_i32, %arg1 : i32, i32
  }
  func.func @transform_2(%arg0: i32, %arg1: i32) -> (i32, i32) {
    %c0_i32 = arith.constant 0 : i32
    %c0_i32_0 = arith.constant 0 : i32
    return %arg1, %c0_i32 : i32, i32
  }
  func.func @transform_3(%arg0: i32, %arg1: i32) -> (i32, i32) {
    %c0_i32 = arith.constant 0 : i32
    %c0_i32_0 = arith.constant 0 : i32
    return %arg0, %c0_i32 : i32, i32
  }
}

</mosaic_0001>

<bundles_post_ra>
// kernel: tpu_custom_call.1
= control target key start
LH: loop header
LB: loop body
LE: loop exit
PB: predicated region body
PF: predicated region fallthrough
CT: control target
= control target key end

     0   :  { %vm21_vm0 = vcmask 261120   ;;  %s470_s0 = inlined_call_operand.vmem [shape: f32[16,32], index: 0, kind: input, shape index: {}]   ;;  %s471_s1 = inlined_call_operand.vmem [shape: f32[32,128], index: 1, kind: input, shape index: {}]   ;;  %s472_s2 = inlined_call_operand.vmem [shape: f32[128,32], index: 2, kind: input, shape index: {}]   ;;  %s473_s3 = inlined_call_operand.hbm [shape: f32[16,32], index: 3, kind: output, shape index: {}]  }
   0x1   :  { %v17_v0 = vld [vmem:[%s471_s1] sm:$0xff]  ;;  %v18_v1 = vld [vmem:[%s471_s1 + $0x8] sm:$0xff]  ;;  %v19_v2 = vld [vmem:[%s471_s1 + $0x10] sm:$0xff] }
   0x2   :  { %v294_v3 = vpack.c.bf16 %v18_v1, %v17_v0  ;;  %v20_v4 = vld [vmem:[%s471_s1 + $0x18] sm:$0xff]  ;;  %v15_v5 = vld [vmem:[%s470_s0] sm:$0xff]  ;;  %v114_v8 = vld [vmem:[%s472_s2 + $0x8] sm:$0xff] }
   0x3   :  { %v298_v6 = vpack.c.bf16 %v20_v4, %v19_v2  ;;  %256 = vmatprep.mubr.msk.f32.mxu0 %vm21_vm0, %v15_v5  ;;  %v113_v7 = vld [vmem:[%s472_s2] sm:$0xff]  ;;  %v115_v9 = vld [vmem:[%s472_s2 + $0x10] sm:$0xff]  ;;  %v116_v11 = vld [vmem:[%s472_s2 + $0x18] sm:$0xff] }
   0x4   :  { %295 = vmatprep.subr.bf16.mxu0 %v294_v3  ;;  %v302_v10 = vpack.c.bf16 %v114_v8, %v113_v7  ;;  %v306_v12 = vpack.c.bf16 %v116_v11, %v115_v9  ;;  %v117_v13 = vld [vmem:[%s472_s2 + $0x20] sm:$0xff]  ;;  %v118_v14 = vld [vmem:[%s472_s2 + $0x28] sm:$0xff] }
   0x5   :  { %297 = vmatpush3.bf16.msra.mxu0 %v294_v3 }
   0x6   :  { %8 = vsyncpa [#allocation3], 0  ;;  %299 = vmatprep.subr.bf16.mxu0 %v298_v6  ;;  %303 = vmatprep.subr.bf16.mxu1 %v302_v10  ;;  %v310_v15 = vpack.c.bf16 %v118_v14, %v117_v13  ;;  %v16_v16 = vld [vmem:[%s470_s0 + $0x8] sm:$0xff]  ;;  %v119_v17 = vld [vmem:[%s472_s2 + $0x30] sm:$0xff] }
   0x7   :  { %305 = vmatpush3.bf16.msra.mxu1 %v302_v10  ;;  %v120_v18 = vld [vmem:[%s472_s2 + $0x38] sm:$0xff]  ;;  %v121_v20 = vld [vmem:[%s472_s2 + $0x40] sm:$0xff]  ;;  %v122_v21 = vld [vmem:[%s472_s2 + $0x48] sm:$0xff] }
   0x8   :  { %307 = vmatprep.subr.bf16.mxu1 %v306_v12  ;;  %v314_v19 = vpack.c.bf16 %v120_v18, %v119_v17  ;;  %v318_v22 = vpack.c.bf16 %v122_v21, %v121_v20  ;;  %v123_v23 = vld [vmem:[%s472_s2 + $0x50] sm:$0xff]  ;;  %v124_v24 = vld [vmem:[%s472_s2 + $0x58] sm:$0xff]  ;;  %v125_v26 = vld [vmem:[%s472_s2 + $0x60] sm:$0xff] }
   0x9   :  { %301 = vmatpush3.bf16.msra.mxu0 %v298_v6  ;;  %v322_v25 = vpack.c.bf16 %v124_v24, %v123_v23  ;;  %v126_v27 = vld [vmem:[%s472_s2 + $0x68] sm:$0xff]  ;;  %v127_v29 = vld [vmem:[%s472_s2 + $0x70] sm:$0xff]  ;;  %v128_v30 = vld [vmem:[%s472_s2 + $0x78] sm:$0xff]  ;;  %s365_s2 = smov [#allocation2]  }
   0xa   :  { %v326_v28 = vpack.c.bf16 %v126_v27, %v125_v26  ;;  %v330_v31 = vpack.c.bf16 %v128_v30, %v127_v29  ;;  %s211_s27 = sshll.u32 %s365_s2, 4  ;;  %s212_s27 = int_to_ptr.vmem [resolvable:$true] %s211_s27 }
   0xb   :  { %309 = vmatpush3.bf16.msra.mxu1 %v306_v12  ;;  %s341_s1 = scalar_lea.vmem %s212_s27, 256  ;;  %p346_p1 = scmp.lt.s32.totalorder %s212_s27, %s212_s27 }
   0xc   :  { %257 = vmatmul.mubr.msk.f32.vlgmr.msra.gmra.mrb[0].mxu0 %vm21_vm0, %v16_v16  ;;  %311 = vmatprep.subr.bf16.mxu1 %v310_v15  ;;  %p342_p0 = scmp.ne.s32.totalorder %s212_s27, %s341_s1  ;;  %p347_p2 = scmp.lt.s32.totalorder %s341_s1, %s341_s1 }
   0xe   :  { %p348_p3 = por %p347_p2, %p346_p1 }
   0xf   :  { %313 = vmatpush3.bf16.msra.mxu1 %v310_v15 }
  0x10   :  { %315 = vmatprep.subr.bf16.mxu1 %v314_v19  ;;  %p349_p4 = pnand %p348_p3, %p342_p0 }
  0x13   :  { %317 = vmatpush3.bf16.msra.mxu1 %v314_v19 }
  0x14   :  { %319 = vmatprep.subr.bf16.mxu1 %v318_v22 }
  0x17   :  { %321 = vmatpush3.bf16.msra.mxu1 %v318_v22 }
  0x18   :  { %323 = vmatprep.subr.bf16.mxu1 %v322_v25 }
  0x1b   :  { %325 = vmatpush3.bf16.msra.mxu1 %v322_v25 }
  0x1c   :  { %327 = vmatprep.subr.bf16.mxu1 %v326_v28 }
  0x1f   :  { %329 = vmatpush3.bf16.msra.mxu1 %v326_v28 }
  0x20   :  { %331 = vmatprep.subr.bf16.mxu1 %v330_v31 }
  0x23   :  { %333 = vmatpush3.bf16.msra.mxu1 %v330_v31 }
  0xdf   :  { %v258_v32 = vpop.f32.mrb[0].mxu0 }
  0xe0   :  { %v106_v33 = vmul.f32 0.70710677, %v258_v32  ;;  %v94_v34 = vpop.f32.mrb[1].mxu0  ;;  %v104_v41 = vmul.f32 0.5, %v258_v32 }
  0xe1   :  { %v105_v35 = vmul.f32 0.70710677, %v94_v34  ;;  %v103_v39 = vmul.f32 0.5, %v94_v34 }
  0xe2   :  { %337 = verf.f32 %v106_v33 }
  0xe3   :  { %339 = verf.f32 %v105_v35 }
  0xec   :  { %v338_v36 = vpop.eup %337 }
  0xed   :  { %v340_v37 = vpop.eup %339  ;;  %v110_v38 = vadd.f32 1.0, %v338_v36 }
  0xee   :  { %v109_v40 = vadd.f32 1.0, %v340_v37 }
  0xef   :  { %v112_v43 = vmul.f32 %v110_v38, %v104_v41 }
  0xf0   :  { %v111_v42 = vmul.f32 %v109_v40, %v103_v39 }
  0xf2   :  { %291 = vmatprep.mubr.f32.mxu1 %v111_v42 }
  0xf3   :  { %292 = vmatmul.mubr.f32.vlgmr.msra.gmra.mrb[0].mxu1 %v112_v43 }
 0x1c6   :  { %v293_v44 = vpop.f32.mrb[0].mxu1 }
 0x1c7   :  { %205 = vst.msk [vmem:[#allocation2 + $0x8] sm:$0xff] %vm21_vm0, %v293_v44  ;;  %v195_v45 = vpop.f32.mrb[1].mxu1 }
 0x1c8   :  { %204 = vst.msk [vmem:[#allocation2] sm:$0xff] %vm21_vm0, %v195_v45 }
 0x1c9   :  { %352 = shalt.err (!%p349_p4)
}
 0x1ca   :  { %s353_s30 = scalar_lea.hbm %s473_s3, 256 }
 0x1cb   :  { %p354_p5 = scmp.ne.s32.totalorder %s473_s3, %s353_s30  ;;  %p357_p6 = scmp.lt.u32.totalorder %s353_s30, %s473_s3 }
 0x1cd   :  { %p359_p7 = pnand %p357_p6, %p354_p5 }
 0x1cf   :  { %362 = shalt.err (!%p359_p7)
}
 0x1d0   :  { %s366_s8 = smov 128   ;;  %s367_s9 = smov 8  }
 0x1d1   :  { %217 = dma.vmem_to_hbm [thread:$0]  %s212_s27, 256, %s473_s3, [#allocation3], %s366_s8, %s366_s8, %s367_s9  }
 0x1d2   :  { %363 = dma.done.wait [#allocation3], 256  }
 0x1d3   :  { %364 = vsyncadd [#allocation3], 4294967040 }
 0x1d4   :  { %221 = vsyncpa [#allocation3], 1 }

// kernel: tpu_custom_call.1
= control target key start
LH: loop header
LB: loop body
LE: loop exit
PB: predicated region body
PF: predicated region fallthrough
CT: control target
= control target key end

     0   :  { %vm19_vm0 = vcmask 261120   ;;  %s494_s0 = inlined_call_operand.vmem [shape: f32[16,32], index: 0, kind: input, shape index: {}]   ;;  %s495_s1 = inlined_call_operand.vmem [shape: f32[32,128], index: 1, kind: input, shape index: {}]   ;;  %s496_s2 = inlined_call_operand.vmem [shape: f32[128,32], index: 2, kind: input, shape index: {}]   ;;  %s497_s3 = inlined_call_operand.hbm [shape: f32[16,32], index: 3, kind: output, shape index: {}]  }
   0x1   :  { %v24_v0 = vld [vmem:[%s495_s1] sm:$0xff]  ;;  %v25_v1 = vld [vmem:[%s495_s1 + $0x8] sm:$0xff]  ;;  %v26_v2 = vld [vmem:[%s495_s1 + $0x10] sm:$0xff] }
   0x2   :  { %v312_v3 = vpack.c.bf16 %v25_v1, %v24_v0  ;;  %v27_v4 = vld [vmem:[%s495_s1 + $0x18] sm:$0xff]  ;;  %v22_v5 = vld [vmem:[%s494_s0] sm:$0xff]  ;;  %v123_v8 = vld [vmem:[%s496_s2 + $0x8] sm:$0xff] }
   0x3   :  { %v316_v6 = vpack.c.bf16 %v27_v4, %v26_v2  ;;  %274 = vmatprep.mubr.msk.f32.mxu0 %vm19_vm0, %v22_v5  ;;  %v122_v7 = vld [vmem:[%s496_s2] sm:$0xff]  ;;  %v124_v9 = vld [vmem:[%s496_s2 + $0x10] sm:$0xff]  ;;  %v125_v11 = vld [vmem:[%s496_s2 + $0x18] sm:$0xff] }
   0x4   :  { %313 = vmatprep.subr.bf16.mxu0 %v312_v3  ;;  %v320_v10 = vpack.c.bf16 %v123_v8, %v122_v7  ;;  %v324_v12 = vpack.c.bf16 %v125_v11, %v124_v9  ;;  %v126_v13 = vld [vmem:[%s496_s2 + $0x20] sm:$0xff]  ;;  %v127_v14 = vld [vmem:[%s496_s2 + $0x28] sm:$0xff] }
   0x5   :  { %315 = vmatpush3.bf16.msra.mxu0 %v312_v3 }
   0x6   :  { %8 = vsyncpa [#allocation4], 0  ;;  %317 = vmatprep.subr.bf16.mxu0 %v316_v6  ;;  %321 = vmatprep.subr.bf16.mxu1 %v320_v10  ;;  %v328_v15 = vpack.c.bf16 %v127_v14, %v126_v13  ;;  %v23_v16 = vld [vmem:[%s494_s0 + $0x8] sm:$0xff]  ;;  %v128_v17 = vld [vmem:[%s496_s2 + $0x30] sm:$0xff]  ;;  %v384_v32 = vmov 0.0  }
   0x7   :  { %323 = vmatpush3.bf16.msra.mxu1 %v320_v10  ;;  %v129_v18 = vld [vmem:[%s496_s2 + $0x38] sm:$0xff]  ;;  %v130_v20 = vld [vmem:[%s496_s2 + $0x40] sm:$0xff]  ;;  %v131_v21 = vld [vmem:[%s496_s2 + $0x48] sm:$0xff]  ;;  %21 = vst.msk [vmem:[#allocation2 + $0x8] sm:$0xff] %vm19_vm0, %v384_v32 }
   0x8   :  { %325 = vmatprep.subr.bf16.mxu1 %v324_v12  ;;  %v332_v19 = vpack.c.bf16 %v129_v18, %v128_v17  ;;  %v336_v22 = vpack.c.bf16 %v131_v21, %v130_v20  ;;  %v132_v23 = vld [vmem:[%s496_s2 + $0x50] sm:$0xff]  ;;  %v133_v24 = vld [vmem:[%s496_s2 + $0x58] sm:$0xff]  ;;  %v134_v26 = vld [vmem:[%s496_s2 + $0x60] sm:$0xff]  ;;  %20 = vst.msk [vmem:[#allocation2] sm:$0xff] %vm19_vm0, %v384_v32 }
   0x9   :  { %319 = vmatpush3.bf16.msra.mxu0 %v316_v6  ;;  %v340_v25 = vpack.c.bf16 %v133_v24, %v132_v23  ;;  %v135_v27 = vld [vmem:[%s496_s2 + $0x68] sm:$0xff]  ;;  %v136_v29 = vld [vmem:[%s496_s2 + $0x70] sm:$0xff]  ;;  %v137_v30 = vld [vmem:[%s496_s2 + $0x78] sm:$0xff]  ;;  %s385_s2 = smov [#allocation3]  }
   0xa   :  { %v344_v28 = vpack.c.bf16 %v135_v27, %v134_v26  ;;  %v348_v31 = vpack.c.bf16 %v137_v30, %v136_v29  ;;  %s229_s27 = sshll.u32 %s385_s2, 4  ;;  %s230_s27 = int_to_ptr.vmem [resolvable:$true] %s229_s27 }
   0xb   :  { %327 = vmatpush3.bf16.msra.mxu1 %v324_v12  ;;  %s360_s1 = scalar_lea.vmem %s230_s27, 256  ;;  %p365_p1 = scmp.lt.s32.totalorder %s230_s27, %s230_s27 }
   0xc   :  { %275 = vmatmul.mubr.msk.f32.vlgmr.msra.gmra.mrb[0].mxu0 %vm19_vm0, %v23_v16  ;;  %329 = vmatprep.subr.bf16.mxu1 %v328_v15  ;;  %p361_p0 = scmp.ne.s32.totalorder %s230_s27, %s360_s1  ;;  %p366_p2 = scmp.lt.s32.totalorder %s360_s1, %s360_s1 }
   0xe   :  { %v121_v45 = vld [vmem:[#allocation2 + $0x8] sm:$0xff]  ;;  %p367_p3 = por %p366_p2, %p365_p1 }
   0xf   :  { %331 = vmatpush3.bf16.msra.mxu1 %v328_v15  ;;  %v120_v46 = vld [vmem:[#allocation2] sm:$0xff] }
  0x10   :  { %333 = vmatprep.subr.bf16.mxu1 %v332_v19  ;;  %p368_p4 = pnand %p367_p3, %p361_p0 }
  0x13   :  { %335 = vmatpush3.bf16.msra.mxu1 %v332_v19 }
  0x14   :  { %337 = vmatprep.subr.bf16.mxu1 %v336_v22 }
  0x17   :  { %339 = vmatpush3.bf16.msra.mxu1 %v336_v22 }
  0x18   :  { %341 = vmatprep.subr.bf16.mxu1 %v340_v25 }
  0x1b   :  { %343 = vmatpush3.bf16.msra.mxu1 %v340_v25 }
  0x1c   :  { %345 = vmatprep.subr.bf16.mxu1 %v344_v28 }
  0x1f   :  { %347 = vmatpush3.bf16.msra.mxu1 %v344_v28 }
  0x20   :  { %349 = vmatprep.subr.bf16.mxu1 %v348_v31 }
  0x23   :  { %351 = vmatpush3.bf16.msra.mxu1 %v348_v31 }
  0xdf   :  { %v276_v33 = vpop.f32.mrb[0].mxu0 }
  0xe0   :  { %v113_v34 = vmul.f32 0.70710677, %v276_v33  ;;  %v101_v35 = vpop.f32.mrb[1].mxu0  ;;  %v111_v42 = vmul.f32 0.5, %v276_v33 }
  0xe1   :  { %v112_v36 = vmul.f32 0.70710677, %v101_v35  ;;  %v110_v40 = vmul.f32 0.5, %v101_v35 }
  0xe2   :  { %356 = verf.f32 %v113_v34 }
  0xe3   :  { %358 = verf.f32 %v112_v36 }
  0xec   :  { %v357_v37 = vpop.eup %356 }
  0xed   :  { %v359_v38 = vpop.eup %358  ;;  %v117_v39 = vadd.f32 1.0, %v357_v37 }
  0xee   :  { %v116_v41 = vadd.f32 1.0, %v359_v38 }
  0xef   :  { %v119_v44 = vmul.f32 %v117_v39, %v111_v42 }
  0xf0   :  { %v118_v43 = vmul.f32 %v116_v41, %v110_v40 }
  0xf2   :  { %309 = vmatprep.mubr.f32.mxu1 %v118_v43 }
  0xf3   :  { %310 = vmatmul.mubr.f32.vlgmr.msra.gmra.mrb[0].mxu1 %v119_v44 }
 0x1c6   :  { %v311_v47 = vpop.f32.mrb[0].mxu1 }
 0x1c7   :  { %v214_v48 = vadd.f32 %v311_v47, %v121_v45  ;;  %v204_v49 = vpop.f32.mrb[1].mxu1 }
 0x1c8   :  { %v213_v50 = vadd.f32 %v204_v49, %v120_v46 }
 0x1c9   :  { %216 = vst.msk [vmem:[#allocation2 + $0x8] sm:$0xff] %vm19_vm0, %v214_v48 }
 0x1ca   :  { %215 = vst.msk [vmem:[#allocation2] sm:$0xff] %vm19_vm0, %v213_v50 }
 0x1d0   :  { %v221_v51 = vld [vmem:[#allocation2 + $0x8] sm:$0xff] }
 0x1d1   :  { %v220_v52 = vld [vmem:[#allocation2] sm:$0xff]  ;;  %223 = vst.msk [vmem:[#allocation3 + $0x8] sm:$0xff] %vm19_vm0, %v221_v51 }
 0x1d2   :  { %222 = vst.msk [vmem:[#allocation3] sm:$0xff] %vm19_vm0, %v220_v52 }
 0x1d3   :  { %371 = shalt.err (!%p368_p4)
}
 0x1d4   :  { %s372_s30 = scalar_lea.hbm %s497_s3, 256 }
 0x1d5   :  { %p373_p5 = scmp.ne.s32.totalorder %s497_s3, %s372_s30  ;;  %p376_p6 = scmp.lt.u32.totalorder %s372_s30, %s497_s3 }
 0x1d7   :  { %p378_p7 = pnand %p376_p6, %p373_p5 }
 0x1d9   :  { %381 = shalt.err (!%p378_p7)
}
 0x1da   :  { %s386_s8 = smov 128   ;;  %s387_s9 = smov 8  }
 0x1db   :  { %235 = dma.vmem_to_hbm [thread:$0]  %s230_s27, 256, %s497_s3, [#allocation4], %s386_s8, %s386_s8, %s387_s9  }
 0x1dc   :  { %382 = dma.done.wait [#allocation4], 256  }
 0x1dd   :  { %383 = vsyncadd [#allocation4], 4294967040 }
 0x1de   :  { %239 = vsyncpa [#allocation4], 1 }

</bundles_post_ra>
